<compile_context>
chip_gen: v7x
topology: tpu7x:2x2x1
jax: 0.10.0
libtpu: 0.0.40
codegen_flags: <defaults>
</compile_context>

<pallas_src>
import jax
import jax.numpy as jnp
from jax.experimental import pallas as pl
from jax.experimental.pallas import tpu as pltpu


def _se_kernel(x_ref, w1t_ref, b1_ref, w2t_ref, b2_ref, o_ref):
    # x_ref: (Bn, C, H*W) block of Bn batch elements.
    x = x_ref[...]
    xf = x.astype(jnp.float32)

    # Squeeze: global average pool over the flattened spatial (lane) axis.
    pooled = jnp.mean(xf, axis=-1)                               # (Bn, C)

    # fc1 (1x1 conv == dense C -> C_r), ReLU.  MXU dot with M = Bn.
    hidden = jnp.dot(pooled, w1t_ref[...],
                     preferred_element_type=jnp.float32) + b1_ref[...]
    hidden = jnp.maximum(hidden, 0.0)                            # (Bn, C_r)

    # fc2 (dense C_r -> C), sigmoid.
    logits = jnp.dot(hidden, w2t_ref[...],
                     preferred_element_type=jnp.float32) + b2_ref[...]
    scale = jax.nn.sigmoid(logits)                               # (Bn, C)

    # Excite: broadcast scale over the spatial axis and multiply.
    o_ref[...] = (xf * scale[:, :, None]).astype(o_ref.dtype)


def _choose_bn(N, C, HW, itemsize, max_block_bytes=2 * 1024 * 1024):
    """Largest divisor of N whose (Bn, C, HW) block fits the VMEM budget,
    while preferring >= 2 grid steps so both v7x TensorCores get work."""
    best = 1
    for bn in range(1, N + 1):
        if N % bn == 0 and bn * C * HW * itemsize <= max_block_bytes:
            best = bn
    if N // best < 2 and N >= 2:
        for bn in range(best - 1, 0, -1):
            if N % bn == 0 and N // bn >= 2:
                best = bn
                break
    return best


def squeeze_excitation(x, w1, b1, w2, b2):
    """x: (N, C, H, W); w1: (C_r, C); b1: (C_r,); w2: (C, C_r); b2: (C,)."""
    N, C, H, W = x.shape
    C_r = w1.shape[0]
    HW = H * W

    # Lane-dense layout: fold spatial dims into the last (128-lane) axis.
    x_flat = x.reshape(N, C, HW)

    # Pre-transpose weights so the kernel does (Bn,C)@(C,C_r) and (Bn,C_r)@(C_r,C).
    w1t = jnp.transpose(w1)            # (C, C_r)
    w2t = jnp.transpose(w2)            # (C_r, C)
    b1_2d = b1.reshape(1, C_r)
    b2_2d = b2.reshape(1, C)

    itemsize = jnp.dtype(x.dtype).itemsize
    Bn = _choose_bn(N, C, HW, itemsize)
    grid = (N // Bn,)

    out_flat = pl.pallas_call(
        _se_kernel,
        out_shape=jax.ShapeDtypeStruct((N, C, HW), x.dtype),
        grid_spec=pltpu.PrefetchScalarGridSpec(
            num_scalar_prefetch=0,
            grid=grid,
            in_specs=[
                pl.BlockSpec((Bn, C, HW), lambda n: (n, 0, 0)),
                pl.BlockSpec((C, C_r), lambda n: (0, 0)),
                pl.BlockSpec((1, C_r), lambda n: (0, 0)),
                pl.BlockSpec((C_r, C), lambda n: (0, 0)),
                pl.BlockSpec((1, C), lambda n: (0, 0)),
            ],
            out_specs=pl.BlockSpec((Bn, C, HW), lambda n: (n, 0, 0)),
        ),
        compiler_params=pltpu.CompilerParams(
            dimension_semantics=("parallel",),
            vmem_limit_bytes=32 * 1024 * 1024,
        ),
    )(x_flat, w1t, b1_2d, w2t, b2_2d)

    return out_flat.reshape(N, C, H, W)


def squeeze_excitation_ref(x, w1, b1, w2, b2):
    """Pure-JAX reference matching the PyTorch forward."""
    pooled = jnp.mean(x, axis=(2, 3))                    # (N, C)
    hidden = jnp.maximum(pooled @ w1.T + b1, 0.0)        # (N, C_r)
    scale = jax.nn.sigmoid(hidden @ w2.T + b2)           # (N, C)
    return x * scale[:, :, None, None]


if __name__ == "__main__":
    key = jax.random.PRNGKey(0)
    N, C, H, W = 2, 4, 16, 16
    squeeze_factor = 4
    C_r = C // squeeze_factor                            # 1

    kx, k1, kb1, k2, kb2 = jax.random.split(key, 5)
    x = jax.random.normal(kx, (N, C, H, W), dtype=jnp.float32)

    # Deterministic parameter init (shapes match nn.Conv2d(.., kernel_size=1))
    w1 = jax.random.normal(k1, (C_r, C), dtype=jnp.float32) * 0.5   # fc1.weight squeezed
    b1 = jax.random.normal(kb1, (C_r,), dtype=jnp.float32) * 0.1    # fc1.bias
    w2 = jax.random.normal(k2, (C, C_r), dtype=jnp.float32) * 0.5   # fc2.weight squeezed
    b2 = jax.random.normal(kb2, (C,), dtype=jnp.float32) * 0.1      # fc2.bias

    out = squeeze_excitation(x, w1, b1, w2, b2)
    out = jax.block_until_ready(out)

    ref = squeeze_excitation_ref(x, w1, b1, w2, b2)
    assert out.shape == ref.shape == (N, C, H, W)
    assert jnp.allclose(out, ref, atol=1e-5, rtol=1e-5)

    print("KERNEL_OK")
</pallas_src>

<mosaic_0001>
module attributes {stable_mosaic.version = 11 : i64} {
  func.func @_se_kernel(%arg0: i32, %arg1: memref<1x4x256xf32, #tpu.memory_space<vmem>>, %arg2: memref<4x1xf32, #tpu.memory_space<vmem>>, %arg3: memref<1x1xf32, #tpu.memory_space<vmem>>, %arg4: memref<1x4xf32, #tpu.memory_space<vmem>>, %arg5: memref<1x4xf32, #tpu.memory_space<vmem>>, %arg6: memref<1x4x256xf32, #tpu.memory_space<vmem>>) attributes {dimension_semantics = [#tpu.dimension_semantics<parallel>], iteration_bounds = array<i64: 2>, scalar_prefetch = 0 : i64, scratch_operands = 0 : i64, tpu.core_type = #tpu.core_type<tc>, window_params = [{transform_indices = @transform_0, window_bounds = array<i64: 1, 4, 256>}, {pipeline_mode = #tpu.pipeline_mode<synchronous>, transform_indices = @transform_1, window_bounds = array<i64: 4, 1>}, {pipeline_mode = #tpu.pipeline_mode<synchronous>, transform_indices = @transform_2, window_bounds = array<i64: 1, 1>}, {pipeline_mode = #tpu.pipeline_mode<synchronous>, transform_indices = @transform_3, window_bounds = array<i64: 1, 4>}, {pipeline_mode = #tpu.pipeline_mode<synchronous>, transform_indices = @transform_4, window_bounds = array<i64: 1, 4>}, {transform_indices = @transform_5, window_bounds = array<i64: 1, 4, 256>}]} {
    %c0 = arith.constant 0 : index
    %c0_0 = arith.constant 0 : index
    %c0_1 = arith.constant 0 : index
    %0 = vector.load %arg1[%c0, %c0_0, %c0_1] : memref<1x4x256xf32, #tpu.memory_space<vmem>>, vector<1x4x256xf32>
    %cst = arith.constant dense<0.000000e+00> : vector<1x4xf32>
    %1 = vector.multi_reduction <add>, %0, %cst [2] : vector<1x4x256xf32> to vector<1x4xf32>
    %cst_2 = arith.constant 2.560000e+02 : f32
    %2 = vector.broadcast %cst_2 : f32 to vector<1x4xf32>
    %3 = arith.divf %1, %2 : vector<1x4xf32>
    %c0_3 = arith.constant 0 : index
    %c0_4 = arith.constant 0 : index
    %4 = vector.load %arg2[%c0_3, %c0_4] : memref<4x1xf32, #tpu.memory_space<vmem>>, vector<4x1xf32>
    %cst_5 = arith.constant dense<0.000000e+00> : vector<1x1xf32>
    %5 = tpu.matmul %3, %4, %cst_5 {dimension_numbers = #tpu.dot_dimension_numbers<[1], [0], [0], [1], [0, 0, 1, 1], [], []>} : vector<1x4xf32>, vector<4x1xf32>, vector<1x1xf32> -> vector<1x1xf32>
    %c0_6 = arith.constant 0 : index
    %c0_7 = arith.constant 0 : index
    %6 = vector.load %arg3[%c0_6, %c0_7] : memref<1x1xf32, #tpu.memory_space<vmem>>, vector<1x1xf32>
    %7 = arith.addf %5, %6 : vector<1x1xf32>
    %cst_8 = arith.constant 0.000000e+00 : f32
    %8 = vector.broadcast %cst_8 : f32 to vector<1x1xf32>
    %9 = arith.maximumf %7, %8 : vector<1x1xf32>
    %c0_9 = arith.constant 0 : index
    %c0_10 = arith.constant 0 : index
    %10 = vector.load %arg4[%c0_9, %c0_10] : memref<1x4xf32, #tpu.memory_space<vmem>>, vector<1x4xf32>
    %cst_11 = arith.constant dense<0.000000e+00> : vector<1x4xf32>
    %11 = tpu.matmul %9, %10, %cst_11 {dimension_numbers = #tpu.dot_dimension_numbers<[1], [0], [0], [1], [0, 0, 1, 1], [], []>} : vector<1x1xf32>, vector<1x4xf32>, vector<1x4xf32> -> vector<1x4xf32>
    %c0_12 = arith.constant 0 : index
    %c0_13 = arith.constant 0 : index
    %12 = vector.load %arg5[%c0_12, %c0_13] : memref<1x4xf32, #tpu.memory_space<vmem>>, vector<1x4xf32>
    %13 = arith.addf %11, %12 : vector<1x4xf32>
    %14 = arith.negf %13 : vector<1x4xf32>
    %15 = math.exp %14 : vector<1x4xf32>
    %cst_14 = arith.constant 1.000000e+00 : f32
    %16 = vector.broadcast %cst_14 : f32 to vector<1x4xf32>
    %17 = arith.addf %16, %15 : vector<1x4xf32>
    %18 = arith.divf %16, %17 : vector<1x4xf32>
    %19 = vector.shape_cast %18 : vector<1x4xf32> to vector<1x4x1xf32>
    %20 = vector.broadcast %19 : vector<1x4x1xf32> to vector<1x4x256xf32>
    %21 = arith.mulf %0, %20 : vector<1x4x256xf32>
    %c0_15 = arith.constant 0 : index
    %c0_16 = arith.constant 0 : index
    %c0_17 = arith.constant 0 : index
    %22 = vector.load %arg6[%c0_15, %c0_16, %c0_17] : memref<1x4x256xf32, #tpu.memory_space<vmem>>, vector<1x4x256xf32>
    tpu.vector_store %arg6[%c0_15, %c0_16, %c0_17], %21 {strides = array<i32>} : memref<1x4x256xf32, #tpu.memory_space<vmem>>, vector<1x4x256xf32>,
    return
  }
  func.func @transform_0(%arg0: i32) -> (i32, i32, i32) {
    %c0_i32 = arith.constant 0 : i32
    %c0_i32_0 = arith.constant 0 : i32
    %c0_i32_1 = arith.constant 0 : i32
    return %arg0, %c0_i32, %c0_i32_0 : i32, i32, i32
  }
  func.func @transform_1(%arg0: i32) -> (i32, i32) {
    %c0_i32 = arith.constant 0 : i32
    %c0_i32_0 = arith.constant 0 : i32
    %c0_i32_1 = arith.constant 0 : i32
    return %c0_i32, %c0_i32_0 : i32, i32
  }
  func.func @transform_2(%arg0: i32) -> (i32, i32) {
    %c0_i32 = arith.constant 0 : i32
    %c0_i32_0 = arith.constant 0 : i32
    %c0_i32_1 = arith.constant 0 : i32
    return %c0_i32, %c0_i32_0 : i32, i32
  }
  func.func @transform_3(%arg0: i32) -> (i32, i32) {
    %c0_i32 = arith.constant 0 : i32
    %c0_i32_0 = arith.constant 0 : i32
    %c0_i32_1 = arith.constant 0 : i32
    return %c0_i32, %c0_i32_0 : i32, i32
  }
  func.func @transform_4(%arg0: i32) -> (i32, i32) {
    %c0_i32 = arith.constant 0 : i32
    %c0_i32_0 = arith.constant 0 : i32
    %c0_i32_1 = arith.constant 0 : i32
    return %c0_i32, %c0_i32_0 : i32, i32
  }
  func.func @transform_5(%arg0: i32) -> (i32, i32, i32) {
    %c0_i32 = arith.constant 0 : i32
    %c0_i32_0 = arith.constant 0 : i32
    %c0_i32_1 = arith.constant 0 : i32
    return %arg0, %c0_i32, %c0_i32_0 : i32, i32, i32
  }
}

</mosaic_0001>

<bundles_post_ra>
// kernel: tpu_custom_call.1
= control target key start
LH: loop header
LB: loop body
LE: loop exit
PB: predicated region body
PF: predicated region fallthrough
CT: control target
= control target key end

     0   :  { %s929_s0 = inlined_call_operand.hbm [shape: f32[2,4,256], index: 0, kind: input, shape index: {}]   ;;  %s930_s1 = inlined_call_operand.vmem [shape: f32[4,1], index: 1, kind: input, shape index: {}]   ;;  %s931_s2 = inlined_call_operand.<no memory space> [shape: f32[1,1], index: 2, kind: input, shape index: {}]   ;;  %s932_s3 = inlined_call_operand.vmem [shape: f32[1,4], index: 3, kind: input, shape index: {}]   ;;  %s933_s4 = inlined_call_operand.vmem [shape: f32[1,4], index: 4, kind: input, shape index: {}]   ;;  %s934_s5 = inlined_call_operand.hbm [shape: f32[2,4,256], index: 5, kind: output, shape index: {}]  }
   0x1   :  { %v10_v0 = vstv %s931_s2 }
   0x2   :  { %11 = vst [vmem:[#allocation2] sm:$0x1] %v10_v0 }
   0x3   :  { %12 = vsyncpa [#allocation4], 0 }
   0x4   :  { %14 = vsyncpa [#allocation4 + $0x1], 0 }
   0x5   :  { %15 = vsyncpa [#allocation5], 0 }
   0x6   :  { %17 = vsyncpa [#allocation5 + $0x1], 0  ;;  %s755_s20 = smov 0   ;;  %s757_s21 = smov 0  }
   0x7   :  { %s759_s22 = smov 0   ;;  %s761_s23 = smov 0  }
   0x8 LB: > { %s776_s2 = sadd.s32 4294967295, %s715_s23   ;;  %s530_s24 = sadd.s32 4294967294, %s715_s23   ;;  %s715_s23 = sphi %s761_s23, %s949_s23   ;;  %s711_s22 = sphi %s759_s22, %s948_s22   ;;  %s707_s21 = sphi %s757_s21, %s947_s21   ;;  %s703_s20 = sphi %s755_s20, %s946_s20  }
   0x9   : > { %s780_s25 = sadd.s32 1, %s715_s23   ;;  %s30_s26 = sadd.s32 1, %s711_s22 }
   0xa   : > { %s27_s27 = ssub.s32 %s715_s23, %s780_s25  ;;  %p37_p0 = scmp.ne.s32.totalorder %s711_s22, %s707_s21 }
   0xb   : > { %p28_p1 = scmp.eq.s32.totalorder %s27_s27, 0  ;;  %p38_p2 = scmp.eq.s32.totalorder %s715_s23, 0 }
   0xc   : > { %p43_p3 = scmp.ne.s32.totalorder %s707_s21, %s703_s20  ;;  %p44_p4 = scmp.eq.s32.totalorder %s776_s2, 0 }
   0xd   : > { %s792_s28 = scalar_select %p28_p1, %s711_s22, %s30_s26  }
   0xe   : > { %p794_p5 = por %p38_p2, %p37_p0  ;;  %p798_p6 = por %p44_p4, %p43_p3 }
   0xf   : > { %p151_p7 = scmp.eq.s32.totalorder %s776_s2, 1  ;;  %p157_p8 = scmp.eq.s32.totalorder %s530_s24, 1 }
  0x10   : > { %p577_p10 = scmp.lt.s32.totalorder %s715_s23, 2  ;;  %s189_s8 = sand.u32 1, %s711_s22  }
  0x11   : > { %p805_p11 = por %p151_p7, %p37_p0  ;;  %p809_p12 = por %p157_p8, %p43_p3 }
  0x12   : > { %s549_s9 = sshll.u32 %s715_s23, 7  ;;  %s533_s10 = sshll.u32 %s189_s8, 3 }
  0x13   : > { %s938_s6 = scalar_select %p805_p11, 1, 0 }
  0x14   : > { %s939_s7 = scalar_select %p809_p12, 1, 0 }
  0x15   : > { %s818_s13 = scalar_lea.hbm %s929_s0, %s549_s9  ;;  %s193_s14 = scalar_lea.vmem [#allocation3], %s533_s10 }
  0x16   : > { %s201_s15 = sshll.u32 %s193_s14, 4  ;;  %p822_p13 = pnand %p577_p10, %p794_p5  ;;  %s826_s15 = int_to_ptr.vmem [resolvable:$true] %s201_s15 }
  0x17   : > { %s190_s17 = scalar_lea.sflag [#allocation4], %s189_s8  ;;  %s619_s18 = scalar_lea.hbm %s818_s13, 128 }
  0x18   : > { %p620_p2 = scmp.ne.s32.totalorder %s818_s13, %s619_s18  ;;  %p621_p3 = pneg %p822_p13 }
  0x19   : > { %s624_s26 = scalar_lea.hbm %s929_s0, 256  ;;  %p625_p5 = scmp.lt.u32.totalorder %s818_s13, %s929_s0 }
  0x1a   : > { %p622_p4 = pnand %p621_p3, %p620_p2  ;;  %p626_p8 = scmp.lt.u32.totalorder %s624_s26, %s619_s18 }
  0x1b   : > { %p628_p9 = scmp.lt.u32.totalorder %s619_s18, %s818_s13 }
  0x1c   : > { %p623_p7 = pneg %p622_p4  ;;  %p627_p10 = por %p626_p8, %p625_p5 }
  0x1e   : > { %p629_p0 = por %p628_p9, %p627_p10 }
  0x20   : > { %p630_p1 = pnand %p629_p0, %p623_p7 }
  0x22   : > { %633 = shalt.err (!%p630_p1)
}
  0x23   : > { %s634_s8 = scalar_lea.vmem %s826_s15, 128  ;;  %s717_s9 = smov [#allocation3]  }
  0x24   : > { %p635_p2 = scmp.ne.s32.totalorder %s826_s15, %s634_s8  ;;  %s639_s10 = sshll.u32 %s717_s9, 4  ;;  %s640_s10 = int_to_ptr.vmem [resolvable:$false] %s639_s10 }
  0x25   : > { %s641_s11 = scalar_lea.vmem %s640_s10, 256  ;;  %p642_p11 = scmp.lt.s32.totalorder %s826_s15, %s640_s10 }
  0x26   : > { %p637_p4 = pnand %p635_p2, %p621_p3  ;;  %p643_p5 = scmp.lt.s32.totalorder %s641_s11, %s634_s8 }
  0x28   : > { %p638_p12 = pneg %p637_p4  ;;  %p644_p8 = por %p643_p5, %p642_p11 }
  0x2a   : > { %p645_p9 = pnand %p644_p8, %p638_p12 }
  0x2c   : > { %648 = shalt.err (!%p645_p9)
}
  0x2d   : > { %572 = dma.hbm_to_vmem [thread:$0]  (!%p822_p13), %s818_s13, 128, %s826_s15, %s190_s17  }
  0x2e   : > { %p941_p0 = scmp.lt.s32.totalorder %s715_s23, 3  ;;  %p942_p1 = scmp.ge.s32.totalorder %s715_s23, 1 }
  0x30   : > { %p207_p3 = pnand %p942_p1, %p941_p0 }
  0x31   : > { %s860_s12 = sand.u32 (!%p207_p3), 1, %s707_s21  }
  0x32   : > { %210 = sbr.rel (%p207_p3) target bundleno = 801 (0x321), region = 40  ;;  %s537_s14 = sshll.u32 (!%p207_p3), %s860_s12, 3 }
  0x33   : > { %s213_s18 = scalar_lea.sflag (!%p207_p3), [#allocation4], %s860_s12  ;;  %s216_s16 = scalar_lea.vmem (!%p207_p3), [#allocation3], %s537_s14 }
  0x39   : > { %694 = dma.done.wait (%p798_p6), %s213_s18, 128  }
  0x3a   : > { %696 = vsyncadd (%p798_p6), %s213_s18, 4294967168  ;;  %vm247_vm0 = vcmask 1043456   ;;  %v243_v1 = vld [vmem:[%s216_s16] sm:$0xff]  ;;  %v718_v6 = vmov 0.0   ;;  %vm719_vm1 = vmmov 0   ;;  %v258_v8 = vlaneseq  ;;  %s550_s26 = sshll.u32 %s776_s2, 7 }
  0x3b   : > { %v245_v2 = vcombine.high %v243_v1, %v243_v1  ;;  %v248_v3 = vsel %vm247_vm0, %v243_v1, 0.0  ;;  %555 = vmatprep.subr.mxu0 %v718_v6  ;;  %v255_v7 = vld [vmem:[%s930_s1] sm:$0xf]  ;;  %560 = vmatprep.subr.mxu1 %v718_v6  ;;  %vm264_vm2 = vcmask 31744   ;;  %vm347_vm3 = vcmask 1040384   ;;  %s242_s27 = scalar_lea.vmem [#allocation6], %s537_s14  ;;  %s885_s10 = scalar_lea.hbm %s934_s5, %s550_s26 }
  0x3c   : > { %556 = vmatpush3.msk.msra.mxu0 %vm247_vm0, %v255_v7  ;;  %557 = vmatprep.mubr.msk.f32.mxu0 %vm719_vm1, %v718_v6  ;;  %v259_v9 = vand.u32 127, %v258_v8  ;;  %v261_v10 = vshrl.u32 %v258_v8, 7  ;;  %v341_v15 = vld [vmem:[%s932_s3] sm:$0x1]  ;;  %vm343_vm4 = vcmask 7168   ;;  %s460_s29 = sshll.u32 %s242_s27, 4  ;;  %s887_s29 = int_to_ptr.vmem [resolvable:$true] %s460_s29 }
  0x3d   : > { %v249_v4 = vsel %vm247_vm0, %v245_v2, 0.0  ;;  %562 = vmatprep.mubr.msk.f32.mxu1 %vm719_vm1, %v718_v6  ;;  %561 = vmatpush3.msk.msra.mxu1 %vm347_vm3, %v341_v15  ;;  %v256_v16 = vld [vmem:[#allocation2] sm:$0x1]  ;;  %v720_v31 = vmov 839922192   ;;  %s446_s11 = scalar_lea.sflag [#allocation5], %s860_s12 }
  0x3e   : > { %v250_v5 = vadd.f32 %v249_v4, %v248_v3  ;;  %v262_v11 = vsub.s32 %v259_v9, %v261_v10  ;;  %v342_v21 = vld [vmem:[%s933_s4] sm:$0x1]  ;;  %v429_v28 = vsub.s32 0, %v261_v10  ;;  %v436_v32 = vunpack.c.l.s4 %v720_v31  ;;  %s649_s18 = scalar_lea.vmem %s887_s29, 128  ;;  %p943_p11 = scmp.ne.s32.totalorder %s938_s6, 0 }
  0x3f   : > { %p650_p6 = scmp.ne.s32.totalorder %s887_s29, %s649_s18  ;;  %s721_s2 = smov [#allocation6]  }
  0x40   : > { %251 = vadd.xlane.f32.xlu0 %v250_v5  ;;  %v437_v33 = vunpack.c.0.s8 %v436_v32  ;;  %s653_s14 = sshll.u32 %s721_s2, 4  ;;  %s654_s14 = int_to_ptr.vmem [resolvable:$false] %s653_s14 }
  0x41   : > { %p651_p12 = pnand %p650_p6, %p943_p11  ;;  %s655_s16 = scalar_lea.vmem %s654_s14, 256 }
  0x42   : > { %v440_v34 = vsub.s32 %v437_v33, %v261_v10  ;;  %p656_p7 = scmp.lt.s32.totalorder %s887_s29, %s654_s14  ;;  %p657_p10 = scmp.lt.s32.totalorder %s655_s16, %s649_s18 }
  0x43   : > { %p652_p13 = pneg %p651_p12 }
  0x44   : > { %p658_p2 = por %p657_p10, %p656_p7 }
  0x46   : > { %p659_p4 = pnand %p658_p2, %p652_p13 }
  0xcd   : > { %v252_v12 = vpop.xlane.xlu0 %251 }
  0xce   : > { %v254_v13 = vmul.f32 0.00390625, %v252_v12 }
  0xd0   : > { %v263_v14 = vrot.slane %v254_v13, %v262_v11 }
  0xd2   : > { %558 = vmatmul.mubr.msk.f32.vlgmr.msra.gmra.mrb[0].mxu0 %vm264_vm2, %v263_v14 }
 0x1a5   : > { %v336_v17 = vpop.f32.mrb[0].mxu0 }
 0x1a6   : > { %v337_v18 = vadd.f32 %v336_v17, %v256_v16  ;;  %v559_v19 = vpop.f32.mrb[1].mxu0 }
 0x1a8   : > { %v340_v20 = vmax.f32 %v337_v18, 0.0 }
 0x1aa   : > { %563 = vmatmul.mubr.msk.f32.vlgmr.msra.gmra.mrb[0].mxu1 %vm343_vm4, %v340_v20 }
 0x27d   : > { %v417_v22 = vpop.f32.mrb[0].mxu1 }
 0x27e   : > { %v418_v23 = vadd.f32 %v417_v22, %v342_v21  ;;  %v564_v24 = vpop.f32.mrb[1].mxu1 }
 0x280   : > { %v543_v25 = vmul.f32 -1.442695, %v418_v23 }
 0x282   : > { %615 = vpow2.f32 %v543_v25 }
 0x28c   : > { %v616_v26 = vpop.eup %615 }
 0x28d   : > { %v424_v27 = vadd.f32 1.0, %v616_v26 }
 0x28f   : > { %617 = vrcp.f32 %v424_v27 }
 0x299   : > { %v618_v29 = vpop.eup %617 }
 0x29a   : > { %v430_v30 = vrot.slane %v618_v29, %v429_v28 }
 0x29c   : > { %432 = vbcast.lane.b32.xlu0 %v430_v30, 256 }
 0x30e   : > { %v433_v35 = vpop.permute.xlu0 %432 }
 0x30f   : > { %v441_v36 = vrot.slane %v433_v35, %v440_v34 }
 0x311   : > { %v443_v37 = vmul.f32 %v441_v36, %v243_v1 }
 0x313   : > { %444 = vst [vmem:[%s242_s27] sm:$0xff] %v443_v37 }
 0x314   : > { %662 = shalt.err (!%p659_p4)
}
 0x315   : > { %s663_s12 = scalar_lea.hbm %s885_s10, 128  ;;  %s667_s30 = scalar_lea.hbm %s934_s5, 256 }
 0x316   : > { %p664_p5 = scmp.ne.s32.totalorder %s885_s10, %s663_s12  ;;  %p668_p0 = scmp.lt.u32.totalorder %s885_s10, %s934_s5 }
 0x317   : > { %p669_p1 = scmp.lt.u32.totalorder %s667_s30, %s663_s12  ;;  %p671_p6 = scmp.lt.u32.totalorder %s663_s12, %s885_s10 }
 0x318   : > { %p665_p8 = pnand %p664_p5, %p943_p11 }
 0x319   : > { %p670_p3 = por %p669_p1, %p668_p0 }
 0x31a   : > { %p666_p9 = pneg %p665_p8 }
 0x31b   : > { %p672_p12 = por %p671_p6, %p670_p3 }
 0x31d   : > { %p673_p13 = pnand %p672_p12, %p666_p9 }
 0x31f   : > { %676 = shalt.err (!%p673_p13)
}
 0x320   : > { %567 = dma.vmem_to_hbm [thread:$0]  (%p943_p11), %s887_s29, 128, %s885_s10, %s446_s11  }
 0x321 PF: > { %s472_s24 = sand.u32 1, %s703_s20   ;;  %p944_p7 = scmp.ne.s32.totalorder %s939_s7, 0 }
 0x322   : > { %p945_p10 = scmp.ge.s32.totalorder %s715_s23, 2  ;;  %s473_s26 = scalar_lea.sflag [#allocation5], %s472_s24 }
 0x324   : > { %p574_p2 = pnand %p945_p10, %p944_p7 }
 0x326   : > { %698 = dma.done.wait (!%p574_p2), %s473_s26, 128  }
 0x327   : > { %700 = vsyncadd (!%p574_p2), %s473_s26, 4294967168  ;;  %p20_p4 = scmp.ge.s32.totalorder %s780_s25, 4   ;;  %s946_s20 = smov %s707_s21 }
 0x328   : > { %s947_s21 = smov %s711_s22  ;;  %s948_s22 = smov %s792_s28 }
 0x329   : > { %s949_s23 = smov %s780_s25  ;;  %22 = sbr.rel (!%p20_p4) target bundleno = 8 (0x8), region = 85 }
 0x330   :  { %478 = vsyncpa [#allocation4], 1 }
 0x331   :  { %480 = vsyncpa [#allocation4 + $0x1], 1 }
 0x332   :  { %481 = vsyncpa [#allocation5], 1 }
 0x333   :  { %483 = vsyncpa [#allocation5 + $0x1], 1 }

</bundles_post_ra>
